<compile_context>
chip_gen: v5e
topology: v5e:2x2
jax: 0.10.0
libtpu: 0.0.40
codegen_flags: <defaults>
</compile_context>

<pallas_src>
import functools

import numpy as np
import jax
import jax.numpy as jnp
from jax.experimental import pallas as pl
from jax.experimental.pallas import tpu as pltpu


# ---------------------------------------------------------------------------
# Deterministic parameter init (mirrors layer_init: orthogonal weight * std,
# constant bias = 0.0).  QR is done on the host (numpy) for robustness; the
# random draw uses jax.random.PRNGKey for determinism.
# Weights are returned in PyTorch layout (out, in), biases as (out,).
# ---------------------------------------------------------------------------
def _orthogonal(key, out_features, in_features, std):
    rows, cols = out_features, in_features
    flat = np.asarray(
        jax.random.normal(key, (max(rows, cols), min(rows, cols)), jnp.float32))
    q, r = np.linalg.qr(flat)
    q = q * np.sign(np.diag(r))  # sign fix (matches torch.nn.init.orthogonal_)
    if rows < cols:
        q = q.T
    return jnp.asarray(std * q[:rows, :cols], dtype=jnp.float32)


def init_net_params(key, input_dim, dim, output_dim, num_layers, action_std=0.01):
    """Returns list of (W, b) with W shaped (out, in) [PyTorch layout], b shaped (out,)."""
    sizes = [(input_dim, dim)] + [(dim, dim)] * (num_layers - 1) + [(dim, output_dim)]
    stds = [float(np.sqrt(2))] * num_layers + [float(action_std)]
    params = []
    for (fan_in, fan_out), std in zip(sizes, stds):
        key, sub = jax.random.split(key)
        w = _orthogonal(sub, fan_out, fan_in, std)          # (out, in)
        params.append((w, jnp.zeros((fan_out,), jnp.float32)))
    return params


# ---------------------------------------------------------------------------
# Pallas kernel: full MLP forward for one batch tile, batch along lanes.
# refs = (w0, b0, ..., w_{L-1}, b_{L-1}, out_ref)
#   w_i     : (out_i, in_i)   compute_dtype   (PyTorch layout)
#   b_i     : (out_i, 1)      f32             (column bias)
#   x_ref   : (in_dim, tb)    f32             (batch in lane axis)
#   out_ref : (out_dim, tb)   f32             (lane-dense store)
# ---------------------------------------------------------------------------
def _mlp_kernel(num_layers_total, compute_dtype, x_ref, *refs):
    out_ref = refs[-1]
    prefs = refs[:-1]

    h = x_ref[...]                                          # (in_dim, tb) f32
    for li in range(num_layers_total):
        w = prefs[2 * li][...]                              # (out, in) compute_dtype
        b = prefs[2 * li + 1][...]                          # (out, 1)  f32
        acc = jnp.dot(w, h.astype(compute_dtype),
                      preferred_element_type=jnp.float32)   # (out, tb) f32
        acc = acc + b                                       # bias add in f32
        if li < num_layers_total - 1:
            h = jnp.tanh(acc)                               # EUP tanh, f32 (v5e-safe)
        else:
            out_ref[...] = acc                              # lane-dense full-width vst


def _pick_batch_tile(B):
    # Prefer large, lane-aligned tiles that still leave >=2 grid steps so the
    # "parallel" batch axis can shard across v7x's two TensorCores.
    for t in (1024, 512, 256, 128):
        if B % t == 0 and B // t >= 2:
            return t
    return B


def net_forward(x, params, *, batch_tile=None, compute_dtype=jnp.bfloat16):
    """x: (B, input_dim) f32, params from init_net_params -> (B, out_dim) f32."""
    B, in_dim = x.shape
    num_layers_total = len(params)
    out_dim = params[-1][0].shape[0]

    tb = _pick_batch_tile(B) if batch_tile is None else batch_tile
    assert B % tb == 0, "batch must be divisible by the batch tile"
    # (8,128) constraint: lane-dense blocks need tb % 128 == 0 unless tb == B.
    assert tb == B or tb % 128 == 0, "batch_tile must be a multiple of 128 (or == B)"

    x_t = x.T  # (in_dim, B): one cheap XLA transpose outside the kernel

    flat_params = []
    in_specs = [pl.BlockSpec((in_dim, tb), lambda i: (0, i))]
    for (w, b) in params:
        w_k = w.astype(compute_dtype)                        # (out, in)
        b_k = b.reshape(-1, 1).astype(jnp.float32)           # (out, 1)
        flat_params.extend([w_k, b_k])
        # Constant index_map -> block revisited every step, no per-step re-DMA.
        in_specs.append(pl.BlockSpec(w_k.shape, lambda i: (0, 0)))
        in_specs.append(pl.BlockSpec(b_k.shape, lambda i: (0, 0)))

    # Explicit VMEM budget: double-buffered x / out tiles + params, with margin.
    param_bytes = sum(int(np.prod(a.shape)) * a.dtype.itemsize for a in flat_params)
    footprint = 2 * (tb * in_dim * 4) + 2 * (out_dim * tb * 4) + 2 * param_bytes
    vmem_limit = int(min(max(8 * footprint, 16 << 20), 64 << 20))

    out_t = pl.pallas_call(
        functools.partial(_mlp_kernel, num_layers_total, compute_dtype),
        out_shape=jax.ShapeDtypeStruct((out_dim, B), jnp.float32),
        grid_spec=pl.GridSpec(
            grid=(B // tb,),
            in_specs=in_specs,
            out_specs=pl.BlockSpec((out_dim, tb), lambda i: (0, i)),
        ),
        compiler_params=pltpu.CompilerParams(
            dimension_semantics=("parallel",),
            vmem_limit_bytes=vmem_limit),
    )(x_t, *flat_params)

    return out_t.T  # (B, out_dim), cheap layout fix outside the kernel


# Pure-JAX reference (matches nn.Linear / nn.Tanh semantics of continuous_net).
def net_ref(x, params):
    h = x
    for (w, b) in params[:-1]:
        h = jnp.tanh(h @ w.T + b)
    w, b = params[-1]
    return h @ w.T + b


if __name__ == "__main__":
    # Small shapes consistent with the module:
    # continuous_net(dim=128, input_dim=32, output_dim=2, num_layers=2,
    #                dropout=0.0, action_std=0.01), batch=256
    # (dim lane-aligned; B=256 -> 2-step grid along the parallel batch axis).
    B, input_dim, dim, output_dim, num_layers = 256, 32, 128, 2, 2

    key = jax.random.PRNGKey(0)
    k_param, k_x = jax.random.split(key)
    params = init_net_params(k_param, input_dim, dim, output_dim, num_layers,
                             action_std=0.01)
    x = jax.random.normal(k_x, (B, input_dim), jnp.float32)

    ref = net_ref(x, params)

    # f32 path: tight check against the reference.
    out_f32 = jax.block_until_ready(net_forward(x, params, compute_dtype=jnp.float32))
    assert out_f32.shape == (B, output_dim)
    np.testing.assert_allclose(np.asarray(out_f32), np.asarray(ref),
                               rtol=1e-4, atol=1e-4)

    # bf16-operand / f32-accumulate path (v6e/v7x MXU-native): relaxed tolerance.
    out_bf16 = jax.block_until_ready(net_forward(x, params, compute_dtype=jnp.bfloat16))
    assert out_bf16.shape == (B, output_dim)
    np.testing.assert_allclose(np.asarray(out_bf16), np.asarray(ref),
                               rtol=5e-2, atol=5e-3)

    print("KERNEL_OK")
</pallas_src>

<mosaic_0001>
module attributes {stable_mosaic.version = 11 : i64} {
  func.func @_mlp_kernel(%arg0: i32, %arg1: memref<32x128xf32, #tpu.memory_space<vmem>>, %arg2: memref<128x32xf32, #tpu.memory_space<vmem>>, %arg3: memref<128x1xf32, #tpu.memory_space<vmem>>, %arg4: memref<128x128xf32, #tpu.memory_space<vmem>>, %arg5: memref<128x1xf32, #tpu.memory_space<vmem>>, %arg6: memref<2x128xf32, #tpu.memory_space<vmem>>, %arg7: memref<2x1xf32, #tpu.memory_space<vmem>>, %arg8: memref<2x128xf32, #tpu.memory_space<vmem>>) attributes {dimension_semantics = [#tpu.dimension_semantics<parallel>], iteration_bounds = array<i64: 2>, scalar_prefetch = 0 : i64, scratch_operands = 0 : i64, tpu.core_type = #tpu.core_type<tc>, window_params = [{transform_indices = @transform_0, window_bounds = array<i64: 32, 128>}, {pipeline_mode = #tpu.pipeline_mode<synchronous>, transform_indices = @transform_1, window_bounds = array<i64: 128, 32>}, {pipeline_mode = #tpu.pipeline_mode<synchronous>, transform_indices = @transform_2, window_bounds = array<i64: 128, 1>}, {pipeline_mode = #tpu.pipeline_mode<synchronous>, transform_indices = @transform_3, window_bounds = array<i64: 128, 128>}, {pipeline_mode = #tpu.pipeline_mode<synchronous>, transform_indices = @transform_4, window_bounds = array<i64: 128, 1>}, {pipeline_mode = #tpu.pipeline_mode<synchronous>, transform_indices = @transform_5, window_bounds = array<i64: 2, 128>}, {pipeline_mode = #tpu.pipeline_mode<synchronous>, transform_indices = @transform_6, window_bounds = array<i64: 2, 1>}, {transform_indices = @transform_7, window_bounds = array<i64: 2, 128>}]} {
    %c0 = arith.constant 0 : index
    %c0_0 = arith.constant 0 : index
    %0 = vector.load %arg1[%c0, %c0_0] : memref<32x128xf32, #tpu.memory_space<vmem>>, vector<32x128xf32>
    %c0_1 = arith.constant 0 : index
    %c0_2 = arith.constant 0 : index
    %1 = vector.load %arg2[%c0_1, %c0_2] : memref<128x32xf32, #tpu.memory_space<vmem>>, vector<128x32xf32>
    %c0_3 = arith.constant 0 : index
    %c0_4 = arith.constant 0 : index
    %2 = vector.load %arg3[%c0_3, %c0_4] : memref<128x1xf32, #tpu.memory_space<vmem>>, vector<128x1xf32>
    %cst = arith.constant dense<0.000000e+00> : vector<128x128xf32>
    %3 = tpu.matmul %1, %0, %cst {dimension_numbers = #tpu.dot_dimension_numbers<[1], [0], [0], [1], [0, 0, 1, 1], [], []>} : vector<128x32xf32>, vector<32x128xf32>, vector<128x128xf32> -> vector<128x128xf32>
    %4 = vector.broadcast %2 : vector<128x1xf32> to vector<128x128xf32>
    %5 = arith.addf %3, %4 : vector<128x128xf32>
    %6 = math.tanh %5 : vector<128x128xf32>
    %c0_5 = arith.constant 0 : index
    %c0_6 = arith.constant 0 : index
    %7 = vector.load %arg4[%c0_5, %c0_6] : memref<128x128xf32, #tpu.memory_space<vmem>>, vector<128x128xf32>
    %c0_7 = arith.constant 0 : index
    %c0_8 = arith.constant 0 : index
    %8 = vector.load %arg5[%c0_7, %c0_8] : memref<128x1xf32, #tpu.memory_space<vmem>>, vector<128x1xf32>
    %cst_9 = arith.constant dense<0.000000e+00> : vector<128x128xf32>
    %9 = tpu.matmul %7, %6, %cst_9 {dimension_numbers = #tpu.dot_dimension_numbers<[1], [0], [0], [1], [0, 0, 1, 1], [], []>} : vector<128x128xf32>, vector<128x128xf32>, vector<128x128xf32> -> vector<128x128xf32>
    %10 = vector.broadcast %8 : vector<128x1xf32> to vector<128x128xf32>
    %11 = arith.addf %9, %10 : vector<128x128xf32>
    %12 = math.tanh %11 : vector<128x128xf32>
    %c0_10 = arith.constant 0 : index
    %c0_11 = arith.constant 0 : index
    %13 = vector.load %arg6[%c0_10, %c0_11] : memref<2x128xf32, #tpu.memory_space<vmem>>, vector<2x128xf32>
    %c0_12 = arith.constant 0 : index
    %c0_13 = arith.constant 0 : index
    %14 = vector.load %arg7[%c0_12, %c0_13] : memref<2x1xf32, #tpu.memory_space<vmem>>, vector<2x1xf32>
    %cst_14 = arith.constant dense<0.000000e+00> : vector<2x128xf32>
    %15 = tpu.matmul %13, %12, %cst_14 {dimension_numbers = #tpu.dot_dimension_numbers<[1], [0], [0], [1], [0, 0, 1, 1], [], []>} : vector<2x128xf32>, vector<128x128xf32>, vector<2x128xf32> -> vector<2x128xf32>
    %16 = vector.broadcast %14 : vector<2x1xf32> to vector<2x128xf32>
    %17 = arith.addf %15, %16 : vector<2x128xf32>
    %c0_15 = arith.constant 0 : index
    %c0_16 = arith.constant 0 : index
    %18 = vector.load %arg8[%c0_15, %c0_16] : memref<2x128xf32, #tpu.memory_space<vmem>>, vector<2x128xf32>
    tpu.vector_store %arg8[%c0_15, %c0_16], %17 {strides = array<i32>} : memref<2x128xf32, #tpu.memory_space<vmem>>, vector<2x128xf32>,
    return
  }
  func.func @transform_0(%arg0: i32) -> (i32, i32) {
    %c0_i32 = arith.constant 0 : i32
    %c0_i32_0 = arith.constant 0 : i32
    return %c0_i32, %arg0 : i32, i32
  }
  func.func @transform_1(%arg0: i32) -> (i32, i32) {
    %c0_i32 = arith.constant 0 : i32
    %c0_i32_0 = arith.constant 0 : i32
    %c0_i32_1 = arith.constant 0 : i32
    return %c0_i32, %c0_i32_0 : i32, i32
  }
  func.func @transform_2(%arg0: i32) -> (i32, i32) {
    %c0_i32 = arith.constant 0 : i32
    %c0_i32_0 = arith.constant 0 : i32
    %c0_i32_1 = arith.constant 0 : i32
    return %c0_i32, %c0_i32_0 : i32, i32
  }
  func.func @transform_3(%arg0: i32) -> (i32, i32) {
    %c0_i32 = arith.constant 0 : i32
    %c0_i32_0 = arith.constant 0 : i32
    %c0_i32_1 = arith.constant 0 : i32
    return %c0_i32, %c0_i32_0 : i32, i32
  }
  func.func @transform_4(%arg0: i32) -> (i32, i32) {
    %c0_i32 = arith.constant 0 : i32
    %c0_i32_0 = arith.constant 0 : i32
    %c0_i32_1 = arith.constant 0 : i32
    return %c0_i32, %c0_i32_0 : i32, i32
  }
  func.func @transform_5(%arg0: i32) -> (i32, i32) {
    %c0_i32 = arith.constant 0 : i32
    %c0_i32_0 = arith.constant 0 : i32
    %c0_i32_1 = arith.constant 0 : i32
    return %c0_i32, %c0_i32_0 : i32, i32
  }
  func.func @transform_6(%arg0: i32) -> (i32, i32) {
    %c0_i32 = arith.constant 0 : i32
    %c0_i32_0 = arith.constant 0 : i32
    %c0_i32_1 = arith.constant 0 : i32
    return %c0_i32, %c0_i32_0 : i32, i32
  }
  func.func @transform_7(%arg0: i32) -> (i32, i32) {
    %c0_i32 = arith.constant 0 : i32
    %c0_i32_0 = arith.constant 0 : i32
    return %c0_i32, %arg0 : i32, i32
  }
}

</mosaic_0001>

<bundles_post_ra>
// kernel: tpu_custom_call.1
= control target key start
LH: loop header
LB: loop body
LE: loop exit
PB: predicated region body
PF: predicated region fallthrough
CT: control target
= control target key end

     0   :  { %12 = vsyncpa [#allocation4], 0  ;;  %s1462_s0 = inlined_call_operand.vmem [shape: f32[32,256], index: 0, kind: input, shape index: {}]   ;;  %s1463_s1 = inlined_call_operand.vmem [shape: f32[128,32], index: 1, kind: input, shape index: {}]   ;;  %s1464_s2 = inlined_call_operand.vmem [shape: f32[128,1], index: 2, kind: input, shape index: {}]   ;;  %s1465_s3 = inlined_call_operand.vmem [shape: f32[128,128], index: 3, kind: input, shape index: {}]   ;;  %s1466_s4 = inlined_call_operand.vmem [shape: f32[128,1], index: 4, kind: input, shape index: {}]   ;;  %s1467_s5 = inlined_call_operand.vmem [shape: f32[2,128], index: 5, kind: input, shape index: {}]   ;;  %s1468_s6 = inlined_call_operand.vmem [shape: f32[2,1], index: 6, kind: input, shape index: {}]   ;;  %s1469_s7 = inlined_call_operand.hbm [shape: f32[2,256], index: 7, kind: output, shape index: {}]  }
   0x1   :  { %14 = vsyncpa [#allocation4 + $0x1], 0  ;;  %s1132_s24 = smov 0   ;;  %s1134_s25 = smov 0  }
   0x2   :  { %s1136_s26 = smov 0   ;;  %s1138_s27 = smov 0  }
   0x3 LB: > { %s871_s28 = sadd.s32 4294967295, %s1089_s27   ;;  %s872_s29 = sadd.s32 4294967294, %s1089_s27   ;;  %s1089_s27 = sphi %s1138_s27, %s1475_s27   ;;  %s1085_s26 = sphi %s1136_s26, %s1474_s26   ;;  %s1081_s25 = sphi %s1134_s25, %s1473_s25   ;;  %s1077_s24 = sphi %s1132_s24, %s1472_s24  }
   0x4   : > { %s1155_s30 = sadd.s32 1, %s1089_s27   ;;  %s27_s8 = sadd.s32 1, %s1085_s26 }
   0x5   : > { %s24_s9 = ssub.s32 %s1089_s27, %s1155_s30  ;;  %p34_p0 = scmp.ne.s32.totalorder %s1085_s26, %s1081_s25 }
   0x6   : > { %p25_p1 = scmp.eq.s32.totalorder %s24_s9, 0  ;;  %p35_p2 = scmp.eq.s32.totalorder %s1089_s27, 0 }
   0x7   : > { %p190_p3 = scmp.eq.s32.totalorder %s871_s28, 1  ;;  %p195_p4 = scmp.ne.s32.totalorder %s1081_s25, %s1077_s24 }
   0x8   : > { %s1168_s10 = scalar_select %p25_p1, %s1085_s26, %s27_s8  }
   0x9   : > { %p36_p5 = por %p35_p2, %p34_p0  ;;  %p1170_p6 = por %p190_p3, %p34_p0 }
   0xa   : > { %p196_p7 = scmp.eq.s32.totalorder %s872_s29, 1  ;;  %p874_p9 = scmp.ge.s32.totalorder %s1089_s27, 2 }
   0xc   : > { %p1174_p8 = por %p196_p7, %p195_p4  ;;  %230 = sbr.rel (%p874_p9) target bundleno = 25 (0x19), region = 40 }
  0x11   : > { %233 = sbr.rel (!%p36_p5) target bundleno = 25 (0x19), region = 44  ;;  %s235_s13 = sand.u32 (%p36_p5), 1, %s1085_s26  }
  0x12   : > { %s876_s14 = sshll.u32 (%p36_p5), %s1089_s27, 3  ;;  %s875_s15 = sshll.u32 (%p36_p5), %s235_s13, 5 }
  0x13   : > { %s239_s18 = scalar_lea.vmem (%p36_p5), %s1462_s0, %s876_s14  ;;  %s237_s19 = scalar_lea.vmem (%p36_p5), [#allocation2], %s875_s15 }
  0x14   : > { %v274_v0 = vld [vmem:[%s239_s18] sm:$0xff] (%p36_p5)  ;;  %v276_v1 = vld [vmem:[%s239_s18 + $0x10] sm:$0xff] (%p36_p5) }
  0x15   : > { %v278_v2 = vld [vmem:[%s239_s18 + $0x20] sm:$0xff] (%p36_p5)  ;;  %275 = vst [vmem:[%s237_s19] sm:$0xff] (%p36_p5), %v274_v0  ;;  %v280_v3 = vld [vmem:[%s239_s18 + $0x30] sm:$0xff] (%p36_p5) }
  0x16   : > { %277 = vst [vmem:[%s237_s19 + $0x8] sm:$0xff] %v276_v1 }
  0x17   : > { %279 = vst [vmem:[%s237_s19 + $0x10] sm:$0xff] %v278_v2 }
  0x18   : > { %281 = vst [vmem:[%s237_s19 + $0x18] sm:$0xff] %v280_v3 }
  0x19 PF: > { %p877_p10 = scmp.ge.s32.totalorder %s1089_s27, 1  ;;  %p286_p11 = scmp.lt.s32.totalorder %s1089_s27, 3 }
  0x1b   : > { %p287_p12 = pnand %p877_p10, %p286_p11 }
  0x1c   : > { %s1195_s29 = sand.u32 (!%p287_p12), 1, %s1081_s25   ;;  %s1047_s23 = scalar_lea.hbm (!%p287_p12), %s1469_s7, 4 }
  0x1d   : > { %290 = sbr.rel (%p287_p12) target bundleno = 636 (0x27c), region = 82  ;;  %s878_s8 = sshll.u32 (!%p287_p12), %s1195_s29, 5 }
  0x1e   : > { %s295_s9 = scalar_lea.vmem (!%p287_p12), [#allocation2], %s878_s8  ;;  %s879_s8 = sshll.u32 (!%p287_p12), %s1195_s29, 1 }
  0x1f   : > { %s323_s16 = scalar_lea.vmem (!%p287_p12), [#allocation3], %s879_s8  ;;  %s792_s19 = scalar_lea.sflag (!%p287_p12), [#allocation4], %s1195_s29 }
  0x20   : > { %s804_s17 = sshll.u32 (!%p287_p12), %s323_s16, 4  ;;  %s805_s17 = int_to_ptr.vmem [resolvable:$true] %s804_s17 }
  0x22   : > { %v359_v4 = vld [vmem:[%s1464_s2 + $0x78] sm:$0xff]  ;;  %v357_v5 = vld [vmem:[%s1464_s2 + $0x68] sm:$0xff]  ;;  %v1091_v6 = vmov 0   ;;  %v326_v8 = vld [vmem:[%s295_s9 + $0x10] sm:$0xff]  ;;  %vm440_vm0 = vcmask 261120  }
  0x23   : > { %961 = vset.pattern.permute.xlu1 %v1091_v6  ;;  %960 = vset.pattern.permute.xlu0 %v1091_v6  ;;  %v327_v7 = vld [vmem:[%s295_s9 + $0x18] sm:$0xff]  ;;  %v325_v10 = vld [vmem:[%s295_s9 + $0x8] sm:$0xff]  ;;  %v358_v11 = vld [vmem:[%s1464_s2 + $0x70] sm:$0xff] }
  0x24   : > { %437 = vperm.xlu0 %960, %v359_v4   ;;  %427 = vperm.xlu1 %961, %v357_v5   ;;  %v355_v9 = vld [vmem:[%s1464_s2 + $0x58] sm:$0xff]  ;;  %v356_v12 = vld [vmem:[%s1464_s2 + $0x60] sm:$0xff]  ;;  %v338_v15 = vld [vmem:[%s1463_s1 + $0x50] sm:$0xff] }
  0x25   : > { %962 = vset.pattern.permute.xlu2 %v1091_v6  ;;  %501 = vmatpush.msra.mxu0 %v327_v7  ;;  %v324_v13 = vld [vmem:[%s295_s9] sm:$0xff]  ;;  %v354_v16 = vld [vmem:[%s1464_s2 + $0x50] sm:$0xff]  ;;  %v353_v17 = vld [vmem:[%s1464_s2 + $0x48] sm:$0xff]  ;;  %s897_s9 = sshll.u32 %s871_s28, 1 }
  0x26   : > { %900 = vmatpush.msra.mxu2 %v327_v7  ;;  %417 = vperm.xlu2 %962, %v355_v9   ;;  %v328_v14 = vld [vmem:[%s1463_s1] sm:$0xff]  ;;  %v329_v19 = vld [vmem:[%s1463_s1 + $0x8] sm:$0xff]  ;;  %v339_v20 = vld [vmem:[%s1463_s1 + $0x58] sm:$0xff]  ;;  %s802_s15 = scalar_lea.hbm %s1469_s7, %s897_s9 }
  0x27   : > { %502 = vmatpush.msra.mxu0 %v326_v8  ;;  %v352_v18 = vld [vmem:[%s1464_s2 + $0x40] sm:$0xff]  ;;  %v351_v21 = vld [vmem:[%s1464_s2 + $0x38] sm:$0xff]  ;;  %v350_v22 = vld [vmem:[%s1464_s2 + $0x30] sm:$0xff]  ;;  %s806_s18 = sshll.u32 %s802_s15, 4  ;;  %s807_s18 = int_to_ptr.hbm [resolvable:$true] %s806_s18 }
  0x28   : > { %901 = vmatpush.msra.mxu2 %v326_v8  ;;  %v349_v23 = vld [vmem:[%s1464_s2 + $0x28] sm:$0xff]  ;;  %v330_v24 = vld [vmem:[%s1463_s1 + $0x10] sm:$0xff]  ;;  %v340_v25 = vld [vmem:[%s1463_s1 + $0x60] sm:$0xff]  ;;  %s1041_s20 = sshra.s32 %s807_s18, 4  ;;  %s1042_s20 = int_to_ptr.hbm [resolvable:$true] %s1041_s20 }
  0x29   : > { %503 = vmatpush.msra.mxu0 %v325_v10  ;;  %v348_v26 = vld [vmem:[%s1464_s2 + $0x20] sm:$0xff]  ;;  %v347_v27 = vld [vmem:[%s1464_s2 + $0x18] sm:$0xff]  ;;  %v346_v28 = vld [vmem:[%s1464_s2 + $0x10] sm:$0xff]  ;;  %s1043_s21 = scalar_lea.hbm %s1042_s20, 2  ;;  %p1048_p2 = scmp.lt.s32.totalorder %s1042_s20, %s1469_s7 }
  0x2a   : > { %902 = vmatpush.msra.mxu2 %v325_v10  ;;  %v331_v29 = vld [vmem:[%s1463_s1 + $0x18] sm:$0xff]  ;;  %v341_v30 = vld [vmem:[%s1463_s1 + $0x68] sm:$0xff]  ;;  %v344_v33 = vld [vmem:[%s1464_s2] sm:$0xff]  ;;  %p1044_p13 = scmp.ne.s32.totalorder %s1042_s20, %s1043_s21  ;;  %p1049_p3 = scmp.lt.s32.totalorder %s1047_s23, %s1043_s21 }
  0x2b   : > { %504 = vmatpush.msra.mxu0 %v324_v13  ;;  %v345_v31 = vld [vmem:[%s1464_s2 + $0x8] sm:$0xff]  ;;  %v601_v32 = vld [vmem:[%s1466_s4 + $0x78] sm:$0xff]  ;;  %v332_v34 = vld [vmem:[%s1463_s1 + $0x20] sm:$0xff] }
  0x2c   : > { %432 = vperm.xlu0 %960, %v358_v11   ;;  %422 = vperm.xlu1 %961, %v356_v12   ;;  %v342_v35 = vld [vmem:[%s1463_s1 + $0x70] sm:$0xff]  ;;  %v598_v37 = vld [vmem:[%s1466_s4 + $0x60] sm:$0xff]  ;;  %v599_v38 = vld [vmem:[%s1466_s4 + $0x68] sm:$0xff]  ;;  %p1045_p0 = pnand %p1044_p13, %p1170_p6  ;;  %p1050_p4 = por %p1049_p3, %p1048_p2 }
  0x2d   : > { %903 = vmatpush.msra.mxu2 %v324_v13  ;;  %880 = vmatmul.msk.f32.vlgmr.msra.gmra.mxu0 %vm440_vm0, %v328_v14  ;;  %v600_v36 = vld [vmem:[%s1466_s4 + $0x70] sm:$0xff]  ;;  %v333_v39 = vld [vmem:[%s1463_s1 + $0x28] sm:$0xff]  ;;  %v343_v40 = vld [vmem:[%s1463_s1 + $0x78] sm:$0xff] }
  0x2e   : > { %890 = vmatmul.msk.f32.vlgmr.msra.gmra.mxu2 %vm440_vm0, %v338_v15  ;;  %412 = vperm.xlu2 %962, %v354_v16   ;;  %v597_v41 = vld [vmem:[%s1466_s4 + $0x58] sm:$0xff]  ;;  %v595_v42 = vld [vmem:[%s1466_s4 + $0x48] sm:$0xff]  ;;  %v596_v43 = vld [vmem:[%s1466_s4 + $0x50] sm:$0xff]  ;;  %p1046_p1 = pneg %p1045_p0 }
  0x2f   : > { %v334_v44 = vld [vmem:[%s1463_s1 + $0x30] sm:$0xff]  ;;  %v594_v45 = vld [vmem:[%s1466_s4 + $0x40] sm:$0xff]  ;;  %v593_v47 = vld [vmem:[%s1466_s4 + $0x38] sm:$0xff] }
  0x30   : > { %v592_v46 = vld [vmem:[%s1466_s4 + $0x30] sm:$0xff]  ;;  %v335_v48 = vld [vmem:[%s1463_s1 + $0x38] sm:$0xff]  ;;  %v591_v49 = vld [vmem:[%s1466_s4 + $0x28] sm:$0xff]  ;;  %p1051_p5 = pnand %p1050_p4, %p1046_p1 }
  0x31   : > { %v589_v50 = vld [vmem:[%s1466_s4 + $0x18] sm:$0xff]  ;;  %v590_v51 = vld [vmem:[%s1466_s4 + $0x20] sm:$0xff]  ;;  %v588_v53 = vld [vmem:[%s1466_s4 + $0x10] sm:$0xff] }
  0x32   : > { %v336_v52 = vld [vmem:[%s1463_s1 + $0x40] sm:$0xff]  ;;  %v587_v55 = vld [vmem:[%s1466_s4 + $0x8] sm:$0xff] }
  0x33   : > { %v586_v54 = vld [vmem:[%s1466_s4] sm:$0xff]  ;;  %v337_v56 = vld [vmem:[%s1463_s1 + $0x48] sm:$0xff] }
  0x34   : > { %407 = vperm.xlu0 %960, %v353_v17   ;;  %402 = vperm.xlu1 %961, %v352_v18   ;;  %v764_v57 = vld [vmem:[%s1468_s6] sm:$0x3] }
  0x35   : > { %881 = vmatmul.msk.f32.gmra.mxu0 %vm440_vm0, %v329_v19 }
  0x36   : > { %891 = vmatmul.msk.f32.gmra.mxu2 %vm440_vm0, %v339_v20  ;;  %397 = vperm.xlu2 %962, %v351_v21  }
  0x3c   : > { %392 = vperm.xlu0 %960, %v350_v22   ;;  %387 = vperm.xlu1 %961, %v349_v23  }
  0x3d   : > { %882 = vmatmul.msk.f32.gmra.mxu0 %vm440_vm0, %v330_v24 }
  0x3e   : > { %892 = vmatmul.msk.f32.gmra.mxu2 %vm440_vm0, %v340_v25  ;;  %382 = vperm.xlu2 %962, %v348_v26  }
  0x44   : > { %377 = vperm.xlu0 %960, %v347_v27   ;;  %372 = vperm.xlu1 %961, %v346_v28  }
  0x45   : > { %883 = vmatmul.msk.f32.gmra.mxu0 %vm440_vm0, %v331_v29 }
  0x46   : > { %893 = vmatmul.msk.f32.gmra.mxu2 %vm440_vm0, %v341_v30  ;;  %367 = vperm.xlu2 %962, %v345_v31  }
  0x4c   : > { %679 = vperm.xlu1 %961, %v601_v32   ;;  %362 = vperm.xlu0 %960, %v344_v33  }
  0x4d   : > { %884 = vmatmul.msk.f32.gmra.mxu0 %vm440_vm0, %v332_v34 }
  0x4e   : > { %894 = vmatmul.msk.f32.gmra.mxu2 %vm440_vm0, %v342_v35  ;;  %674 = vperm.xlu2 %962, %v600_v36  }
  0x54   : > { %664 = vperm.xlu1 %961, %v598_v37   ;;  %669 = vperm.xlu0 %960, %v599_v38  }
  0x55   : > { %885 = vmatmul.msk.f32.gmra.mxu0 %vm440_vm0, %v333_v39 }
  0x56   : > { %895 = vmatmul.msk.f32.gmra.mxu2 %vm440_vm0, %v343_v40  ;;  %659 = vperm.xlu2 %962, %v597_v41  }
  0x5c   : > { %649 = vperm.xlu1 %961, %v595_v42   ;;  %654 = vperm.xlu0 %960, %v596_v43  }
  0x5d   : > { %886 = vmatmul.msk.f32.gmra.mxu0 %vm440_vm0, %v334_v44 }
  0x5e   : > { %644 = vperm.xlu2 %962, %v594_v45  }
  0x64   : > { %634 = vperm.xlu1 %961, %v592_v46   ;;  %639 = vperm.xlu0 %960, %v593_v47  }
  0x65   : > { %887 = vmatmul.msk.f32.gmra.mxu0 %vm440_vm0, %v335_v48 }
  0x66   : > { %629 = vperm.xlu2 %962, %v591_v49  }
  0x6c   : > { %619 = vperm.xlu1 %961, %v589_v50   ;;  %624 = vperm.xlu0 %960, %v590_v51  }
  0x6d   : > { %888 = vmatmul.msk.f32.gmra.mxu0 %vm440_vm0, %v336_v52 }
  0x6e   : > { %614 = vperm.xlu2 %962, %v588_v53  }
  0x74   : > { %604 = vperm.xlu1 %961, %v586_v54   ;;  %609 = vperm.xlu0 %960, %v587_v55  }
  0x75   : > { %889 = vmatmul.msk.f32.gmra.mxu0 %vm440_vm0, %v337_v56 }
  0x76   : > { %767 = vperm.xlu2 %962, %v764_v57   ;;  %v570_v57 = vld [vmem:[%s1465_s3] sm:$0xff] }
  0x80   : > { %v418_v7 = vpop.permute.xlu2 %417 }
  0x88   : > { %v413_v16 = vpop.permute.xlu2 %412 }
  0x90   : > { %v398_v26 = vpop.permute.xlu2 %397 }
  0x96   : > { %v438_v3 = vpop.permute.xlu0 %437  ;;  %v428_v5 = vpop.permute.xlu1 %427 }
  0x98   : > { %v383_v34 = vpop.permute.xlu2 %382 }
  0x9e   : > { %v433_v8 = vpop.permute.xlu0 %432  ;;  %v423_v14 = vpop.permute.xlu1 %422 }
  0xa0   : > { %v368_v44 = vpop.permute.xlu2 %367 }
  0xa6   : > { %v408_v21 = vpop.permute.xlu0 %407  ;;  %v403_v27 = vpop.permute.xlu1 %402 }
  0xaa   : > { %v1355_v58 = vpop.f32.mrf.mxu0 }
  0xae   : > { %v393_v30 = vpop.permute.xlu0 %392  ;;  %v388_v35 = vpop.permute.xlu1 %387 }
  0xb1   : > { %v536_v59 = vpop.f32.mrf.mxu2 }
  0xb2   : > { %v1357_v60 = vpop.f32.mrf.mxu0  ;;  %v537_v20 = vadd.f32 %v536_v59, %v413_v16 }
  0xb3   : > { %v510_v50 = vadd.f32 %v1357_v60, %v368_v44  ;;  %v571_v60 = vld [vmem:[%s1465_s3 + $0x8] sm:$0xff] }
  0xb6   : > { %v378_v37 = vpop.permute.xlu0 %377  ;;  %v373_v45 = vpop.permute.xlu1 %372 }
  0xb9   : > { %v539_v61 = vpop.f32.mrf.mxu2 }
  0xba   : > { %v1359_v62 = vpop.f32.mrf.mxu0  ;;  %v540_v17 = vadd.f32 %v539_v61, %v418_v7  ;;  %v579_v61 = vld [vmem:[%s1465_s3 + $0x48] sm:$0xff]  ;;  %v584_v7 = vld [vmem:[%s1465_s3 + $0x70] sm:$0xff] }
  0xbb   : > { %v513_v47 = vadd.f32 %v1359_v62, %v373_v45  ;;  %v572_v62 = vld [vmem:[%s1465_s3 + $0x10] sm:$0xff] }
  0xbe   : > { %v363_v48 = vpop.permute.xlu0 %362 }
  0xbf   : > { %v507_v52 = vadd.f32 %v1355_v58, %v363_v48  ;;  %v578_v58 = vld [vmem:[%s1465_s3 + $0x40] sm:$0xff] }
  0xc1   : > { %v542_v63 = vpop.f32.mrf.mxu2 }
  0xc2   : > { %v1361_v0 = vpop.f32.mrf.mxu0  ;;  %v543_v15 = vadd.f32 %v542_v63, %v423_v14  ;;  %v580_v63 = vld [vmem:[%s1465_s3 + $0x50] sm:$0xff] }
  0xc3   : > { %v516_v43 = vadd.f32 %v1361_v0, %v378_v37  ;;  %v573_v0 = vld [vmem:[%s1465_s3 + $0x18] sm:$0xff] }
  0xc9   : > { %v545_v1 = vpop.f32.mrf.mxu2 }
  0xca   : > { %v518_v2 = vpop.f32.mrf.mxu0  ;;  %v546_v13 = vadd.f32 %v545_v1, %v428_v5  ;;  %v581_v1 = vld [vmem:[%s1465_s3 + $0x58] sm:$0xff]  ;;  %v583_v5 = vld [vmem:[%s1465_s3 + $0x68] sm:$0xff] }
  0xcb   : > { %v519_v41 = vadd.f32 %v518_v2, %v383_v34  ;;  %v574_v2 = vld [vmem:[%s1465_s3 + $0x20] sm:$0xff] }
  0xd1   : > { %v548_v4 = vpop.f32.mrf.mxu2 }
  0xd2   : > { %v521_v6 = vpop.f32.mrf.mxu0  ;;  %v549_v9 = vadd.f32 %v548_v4, %v433_v8  ;;  %v575_v4 = vld [vmem:[%s1465_s3 + $0x28] sm:$0xff]  ;;  %v577_v8 = vld [vmem:[%s1465_s3 + $0x38] sm:$0xff] }
  0xd3   : > { %v522_v39 = vadd.f32 %v521_v6, %v388_v35  ;;  %v576_v6 = vld [vmem:[%s1465_s3 + $0x30] sm:$0xff] }
  0xd4   : > { %963 = vtanh.f32 %v549_v9  ;;  %v585_v9 = vld [vmem:[%s1465_s3 + $0x78] sm:$0xff] }
  0xd9   : > { %v551_v10 = vpop.f32.mrf.mxu2 }
  0xda   : > { %v552_v11 = vadd.f32 %v551_v10, %v438_v3  ;;  %v524_v12 = vpop.f32.mrf.mxu0  ;;  %v964_v18 = vpop.eup %963  ;;  %v582_v3 = vld [vmem:[%s1465_s3 + $0x60] sm:$0xff] }
  0xdb   : > { %v525_v38 = vadd.f32 %v524_v12, %v393_v30 }
  0xdc   : > { %965 = vtanh.f32 %v552_v11 }
  0xdd   : > { %967 = vtanh.f32 %v546_v13 }
  0xde   : > { %969 = vtanh.f32 %v543_v15 }
  0xdf   : > { %971 = vtanh.f32 %v540_v17 }
  0xe0   : > { %973 = vtanh.f32 %v537_v20 }
  0xe2   : > { %v966_v19 = vpop.eup %965  ;;  %v527_v22 = vpop.f32.mrf.mxu0 }
  0xe3   : > { %682 = vmatpush.msra.mxu1 %v966_v19  ;;  %904 = vmatpush.msra.mxu3 %v966_v19  ;;  %v968_v23 = vpop.eup %967  ;;  %v528_v36 = vadd.f32 %v527_v22, %v398_v26  ;;  %v680_v19 = vpop.permute.xlu1 %679 }
  0xe4   : > { %v970_v24 = vpop.eup %969 }
  0xe5   : > { %683 = vmatpush.msra.mxu1 %v964_v18  ;;  %905 = vmatpush.msra.mxu3 %v964_v18  ;;  %v972_v25 = vpop.eup %971 }
  0xe6   : > { %v974_v29 = vpop.eup %973 }
  0xe7   : > { %684 = vmatpush.msra.mxu1 %v968_v23  ;;  %906 = vmatpush.msra.mxu3 %v968_v23  ;;  %v670_v23 = vpop.permute.xlu0 %669 }
  0xe9   : > { %685 = vmatpush.msra.mxu1 %v970_v24  ;;  %907 = vmatpush.msra.mxu3 %v970_v24 }
  0xea   : > { %v530_v28 = vpop.f32.mrf.mxu0 }
  0xeb   : > { %686 = vmatpush.msra.mxu1 %v972_v25  ;;  %908 = vmatpush.msra.mxu3 %v972_v25  ;;  %v531_v32 = vadd.f32 %v530_v28, %v403_v27  ;;  %v665_v24 = vpop.permute.xlu1 %664 }
  0xed   : > { %687 = vmatpush.msra.mxu1 %v974_v29  ;;  %909 = vmatpush.msra.mxu3 %v974_v29 }
  0xef   : > { %v655_v28 = vpop.permute.xlu0 %654 }
  0xf2   : > { %v533_v31 = vpop.f32.mrf.mxu0 }
  0xf3   : > { %v534_v33 = vadd.f32 %v533_v31, %v408_v21  ;;  %v675_v21 = vpop.permute.xlu2 %674  ;;  %v650_v29 = vpop.permute.xlu1 %649 }
  0xf5   : > { %975 = vtanh.f32 %v534_v33 }
  0xf6   : > { %977 = vtanh.f32 %v531_v32 }
  0xf7   : > { %979 = vtanh.f32 %v528_v36  ;;  %v640_v37 = vpop.permute.xlu0 %639 }
  0xf8   : > { %981 = vtanh.f32 %v525_v38 }
  0xf9   : > { %983 = vtanh.f32 %v522_v39 }
  0xfa   : > { %985 = vtanh.f32 %v519_v41 }
  0xfb   : > { %v976_v40 = vpop.eup %975  ;;  %987 = vtanh.f32 %v516_v43  ;;  %v660_v27 = vpop.permute.xlu2 %659 }
  0xfc   : > { %688 = vmatpush.msra.mxu1 %v976_v40  ;;  %910 = vmatpush.msra.mxu3 %v976_v40  ;;  %v978_v42 = vpop.eup %977  ;;  %989 = vtanh.f32 %v513_v47  ;;  %v635_v39 = vpop.permute.xlu1 %634 }
  0xfd   : > { %v980_v46 = vpop.eup %979  ;;  %991 = vtanh.f32 %v510_v50 }
  0xfe   : > { %689 = vmatpush.msra.mxu1 %v978_v42  ;;  %911 = vmatpush.msra.mxu3 %v978_v42  ;;  %v982_v49 = vpop.eup %981  ;;  %993 = vtanh.f32 %v507_v52 }
  0xff   : > { %v984_v51 = vpop.eup %983  ;;  %v625_v50 = vpop.permute.xlu0 %624 }
 0x100   : > { %690 = vmatpush.msra.mxu1 %v980_v46  ;;  %912 = vmatpush.msra.mxu3 %v980_v46  ;;  %v986_v53 = vpop.eup %985 }
 0x101   : > { %v988_v54 = vpop.eup %987 }
 0x102   : > { %691 = vmatpush.msra.mxu1 %v982_v49  ;;  %913 = vmatpush.msra.mxu3 %v982_v49  ;;  %v990_v55 = vpop.eup %989 }
 0x103   : > { %v992_v56 = vpop.eup %991  ;;  %v645_v35 = vpop.permute.xlu2 %644 }
 0x104   : > { %692 = vmatpush.msra.mxu1 %v984_v51  ;;  %914 = vmatpush.msra.mxu3 %v984_v51  ;;  %v994_v59 = vpop.eup %993 }
 0x106   : > { %693 = vmatpush.msra.mxu1 %v986_v53  ;;  %915 = vmatpush.msra.mxu3 %v986_v53  ;;  %v620_v53 = vpop.permute.xlu1 %619 }
 0x108   : > { %694 = vmatpush.msra.mxu1 %v988_v54  ;;  %916 = vmatpush.msra.mxu3 %v988_v54 }
 0x10a   : > { %695 = vmatpush.msra.mxu1 %v990_v55  ;;  %917 = vmatpush.msra.mxu3 %v990_v55 }
 0x10b   : > { %v630_v47 = vpop.permute.xlu2 %629 }
 0x10c   : > { %696 = vmatpush.msra.mxu1 %v992_v56  ;;  %918 = vmatpush.msra.mxu3 %v992_v56 }
 0x10e   : > { %697 = vmatpush.msra.mxu1 %v994_v59  ;;  %919 = vmatpush.msra.mxu3 %v994_v59 }
 0x10f   : > { %698 = vmatmul.f32.vlgmr.msra.gmra.mxu1 %v570_v57  ;;  %722 = vmatmul.f32.vlgmr.msra.gmra.mxu3 %v578_v58 }
 0x117   : > { %701 = vmatmul.f32.gmra.mxu1 %v571_v60  ;;  %725 = vmatmul.f32.gmra.mxu3 %v579_v61  ;;  %v615_v60 = vpop.permute.xlu2 %614 }
 0x11f   : > { %704 = vmatmul.f32.gmra.mxu1 %v572_v62  ;;  %728 = vmatmul.f32.gmra.mxu3 %v580_v63  ;;  %v610_v63 = vpop.permute.xlu0 %609 }
 0x127   : > { %707 = vmatmul.f32.gmra.mxu1 %v573_v0  ;;  %731 = vmatmul.f32.gmra.mxu3 %v581_v1 }
 0x12f   : > { %710 = vmatmul.f32.gmra.mxu1 %v574_v2  ;;  %734 = vmatmul.f32.gmra.mxu3 %v582_v3  ;;  %v605_v2 = vpop.permute.xlu1 %604 }
 0x137   : > { %713 = vmatmul.f32.gmra.mxu1 %v575_v4  ;;  %737 = vmatmul.f32.gmra.mxu3 %v583_v5 }
 0x13f   : > { %716 = vmatmul.f32.gmra.mxu1 %v576_v6  ;;  %740 = vmatmul.f32.gmra.mxu3 %v584_v7 }
 0x147   : > { %719 = vmatmul.f32.gmra.mxu1 %v577_v8  ;;  %743 = vmatmul.f32.gmra.mxu3 %v585_v9  ;;  %v763_v9 = vld [vmem:[%s1467_s5] sm:$0x3] }
 0x18c   : > { %v1415_v10 = vpop.f32.mrf.mxu1 }
 0x18d   : > { %v700_v4 = vadd.f32 %v1415_v10, %v605_v2 }
 0x192   : > { %v723_v11 = vpop.f32.mrf.mxu3 }
 0x193   : > { %v724_v46 = vadd.f32 %v723_v11, %v645_v35  ;;  %v768_v11 = vpop.permute.xlu2 %767 }
 0x194   : > { %v1417_v12 = vpop.f32.mrf.mxu1 }
 0x195   : > { %v703_v1 = vadd.f32 %v1417_v12, %v610_v63 }
 0x19a   : > { %v726_v13 = vpop.f32.mrf.mxu3 }
 0x19b   : > { %v727_v43 = vadd.f32 %v726_v13, %v650_v29 }
 0x19c   : > { %v1419_v15 = vpop.f32.mrf.mxu1 }
 0x19d   : > { %v706_v62 = vadd.f32 %v1419_v15, %v615_v60 }
 0x1a2   : > { %v729_v14 = vpop.f32.mrf.mxu3 }
 0x1a3   : > { %v730_v41 = vadd.f32 %v729_v14, %v655_v28 }
 0x1a4   : > { %v708_v17 = vpop.f32.mrf.mxu1 }
 0x1a5   : > { %v709_v59 = vadd.f32 %v708_v17, %v620_v53 }
 0x1aa   : > { %v732_v16 = vpop.f32.mrf.mxu3 }
 0x1ab   : > { %v733_v38 = vadd.f32 %v732_v16, %v660_v27 }
 0x1ac   : > { %v711_v20 = vpop.f32.mrf.mxu1 }
 0x1ad   : > { %v712_v57 = vadd.f32 %v711_v20, %v625_v50 }
 0x1b2   : > { %v735_v18 = vpop.f32.mrf.mxu3 }
 0x1b3   : > { %v736_v36 = vadd.f32 %v735_v18, %v665_v24 }
 0x1b4   : > { %v714_v25 = vpop.f32.mrf.mxu1 }
 0x1b5   : > { %v715_v55 = vadd.f32 %v714_v25, %v630_v47 }
 0x1ba   : > { %v738_v22 = vpop.f32.mrf.mxu3 }
 0x1bb   : > { %v739_v34 = vadd.f32 %v738_v22, %v670_v23 }
 0x1bc   : > { %v717_v33 = vpop.f32.mrf.mxu1 }
 0x1bd   : > { %v718_v52 = vadd.f32 %v717_v33, %v635_v39 }
 0x1c2   : > { %v741_v26 = vpop.f32.mrf.mxu3 }
 0x1c3   : > { %v742_v31 = vadd.f32 %v741_v26, %v675_v21 }
 0x1c4   : > { %v720_v44 = vpop.f32.mrf.mxu1 }
 0x1c5   : > { %v721_v49 = vadd.f32 %v720_v44, %v640_v37 }
 0x1ca   : > { %v744_v30 = vpop.f32.mrf.mxu3 }
 0x1cb   : > { %v745_v32 = vadd.f32 %v744_v30, %v680_v19 }
 0x1cd   : > { %995 = vtanh.f32 %v745_v32 }
 0x1ce   : > { %997 = vtanh.f32 %v742_v31 }
 0x1cf   : > { %999 = vtanh.f32 %v739_v34 }
 0x1d0   : > { %1001 = vtanh.f32 %v736_v36 }
 0x1d1   : > { %1003 = vtanh.f32 %v733_v38 }
 0x1d2   : > { %1005 = vtanh.f32 %v730_v41 }
 0x1d3   : > { %v996_v40 = vpop.eup %995  ;;  %1007 = vtanh.f32 %v727_v43 }
 0x1d4   : > { %770 = vmatpush.msrb.mxu2 %v996_v40  ;;  %v998_v42 = vpop.eup %997  ;;  %1009 = vtanh.f32 %v724_v46 }
 0x1d5   : > { %v1000_v45 = vpop.eup %999  ;;  %1011 = vtanh.f32 %v721_v49 }
 0x1d6   : > { %771 = vmatpush.msrb.mxu2 %v998_v42  ;;  %v1002_v48 = vpop.eup %1001  ;;  %1013 = vtanh.f32 %v718_v52 }
 0x1d7   : > { %v1004_v51 = vpop.eup %1003  ;;  %1015 = vtanh.f32 %v715_v55 }
 0x1d8   : > { %772 = vmatpush.msrb.mxu2 %v1000_v45  ;;  %v1006_v54 = vpop.eup %1005  ;;  %1017 = vtanh.f32 %v712_v57 }
 0x1d9   : > { %v1008_v56 = vpop.eup %1007  ;;  %1019 = vtanh.f32 %v709_v59 }
 0x1da   : > { %773 = vmatpush.msrb.mxu2 %v1002_v48  ;;  %v1010_v58 = vpop.eup %1009  ;;  %1021 = vtanh.f32 %v706_v62 }
 0x1db   : > { %v1012_v61 = vpop.eup %1011  ;;  %1023 = vtanh.f32 %v703_v1 }
 0x1dc   : > { %774 = vmatpush.msrb.mxu2 %v1004_v51  ;;  %v1014_v0 = vpop.eup %1013  ;;  %1025 = vtanh.f32 %v700_v4 }
 0x1dd   : > { %v1016_v3 = vpop.eup %1015 }
 0x1de   : > { %775 = vmatpush.msrb.mxu2 %v1006_v54  ;;  %v1018_v5 = vpop.eup %1017 }
 0x1df   : > { %v1020_v6 = vpop.eup %1019 }
 0x1e0   : > { %776 = vmatpush.msrb.mxu2 %v1008_v56  ;;  %v1022_v7 = vpop.eup %1021 }
 0x1e1   : > { %v1024_v8 = vpop.eup %1023 }
 0x1e2   : > { %777 = vmatpush.msrb.mxu2 %v1010_v58  ;;  %v1026_v10 = vpop.eup %1025 }
 0x1e4   : > { %778 = vmatpush.msrb.mxu2 %v1012_v61 }
 0x1e6   : > { %779 = vmatpush.msrb.mxu2 %v1014_v0 }
 0x1e8   : > { %780 = vmatpush.msrb.mxu2 %v1016_v3 }
 0x1ea   : > { %781 = vmatpush.msrb.mxu2 %v1018_v5 }
 0x1ec   : > { %782 = vmatpush.msrb.mxu2 %v1020_v6 }
 0x1ee   : > { %783 = vmatpush.msrb.mxu2 %v1022_v7 }
 0x1f0   : > { %784 = vmatpush.msrb.mxu2 %v1024_v8 }
 0x1f2   : > { %785 = vmatpush.msrb.mxu2 %v1026_v10 }
 0x1f3   : > { %786 = vmatmul.f32.vlgmr.msrb.gmra.mxu2 %v763_v9 }
 0x276   : > { %v787_v12 = vpop.f32.mrf.mxu2 }
 0x277   : > { %v788_v13 = vadd.f32 %v787_v12, %v768_v11 }
 0x279   : > { %790 = vst [vmem:[%s323_s16] sm:$0x3] %v788_v13 }
 0x27a   : > { %1054 = shalt.err (!%p1051_p5)
}
 0x27b   : > { %920 = dma.vmem_to_hbm [thread:$0]  (%p1170_p6), %s805_s17, 32, %s807_s18, %s792_s19  }
 0x27c PF: > { %s818_s29 = sand.u32 1, %s1077_s24   ;;  %p923_p7 = pnand %p874_p9, %p1174_p8 }
 0x27d   : > { %s819_s13 = scalar_lea.sflag [#allocation4], %s818_s29 }
 0x27e   : > { %p924_p10 = pneg %p923_p7 }
 0x280   : > { %1072 = dma.done.wait (%p924_p10), %s819_s13, 32  }
 0x281   : > { %1074 = vsyncadd (%p924_p10), %s819_s13, 4294967264  ;;  %p17_p11 = scmp.ge.s32.totalorder %s1155_s30, 4   ;;  %s1472_s24 = smov %s1081_s25 }
 0x282   : > { %s1473_s25 = smov %s1085_s26  ;;  %s1474_s26 = smov %s1168_s10 }
 0x283   : > { %s1475_s27 = smov %s1155_s30  ;;  %19 = sbr.rel (!%p17_p11) target bundleno = 3 (0x3), region = 126 }
 0x288   :  { %825 = vsyncpa [#allocation4], 1 }
 0x289   :  { %827 = vsyncpa [#allocation4 + $0x1], 1 }

</bundles_post_ra>
